<compile_context>
chip_gen: v7x
topology: tpu7x:2x2x1
jax: 0.10.0
libtpu: 0.0.40
codegen_flags: <defaults>
</compile_context>

<pallas_src>
import functools

import jax
import jax.numpy as jnp
from jax import lax
from jax.experimental import pallas as pl
from jax.experimental.pallas import tpu as pltpu

BN_EPS = 1e-5


# ----------------------------------------------------------------------------
# Hardware-aware sizing
# ----------------------------------------------------------------------------
def _round_up(a, b):
    return (a + b - 1) // b * b


def _vmem_capacity_bytes():
    try:
        info = pltpu.get_tpu_info()
        for attr in ("vmem_capacity_bytes", "vmem_size_bytes", "vmem_bytes"):
            cap = getattr(info, attr, None)
            if cap:
                return int(cap)
    except Exception:
        pass
    return 64 * 1024 * 1024          # conservative fallback (v7x per-core VMEM)


_VMEM_CAP = _vmem_capacity_bytes()
# ~48 MiB on v7x (64 MiB physical), up to 96 MiB on v5e/v6e (128 MiB physical).
_VMEM_LIMIT = int(min(_VMEM_CAP * 3 // 4, 96 * 1024 * 1024))
_BLOCK_BUDGET = _VMEM_LIMIT * 4 // 5


def _compiler_params(semantics):
    return pltpu.CompilerParams(dimension_semantics=semantics,
                                vmem_limit_bytes=_VMEM_LIMIT)


def _tile_n(c_out):
    # Full channel dim when it fits one tile (always a legal block, no OOB
    # channel reads); otherwise lane-dense 512-wide tiles (partial last tile is
    # clipped by Pallas on writeback).
    return c_out if c_out <= 512 else 512


def _rm_tiles(m, c_in, c_out):
    """Tile sizes for the row-major (M, C_in) -> (M, C_out) kernels."""
    tn = _tile_n(c_out)
    tk = c_in
    if c_in > 1024:
        for cand in (1024, 768, 512, 384, 256, 128):
            if c_in % cand == 0:
                tk = cand
                break
        # TODO(synk): zero-pad x/w along c_in to enable K tiling when c_in has
        # no multiple-of-128 divisor (padded K garbage would corrupt the dot).
    fixed = 4 * (2 * tk * tn + 3 * 2 * tn)       # dbuf weight + bias/scale/shift
    per_row = 4 * (2 * tk + 2 * tn + tn)         # dbuf x + dbuf out + acc scratch
    tm = 8
    for cand in (2048, 1024, 512, 256, 128, 64, 32, 16, 8):
        if fixed + cand * per_row <= _BLOCK_BUDGET:
            tm = cand
            break
    tm = min(tm, _round_up(m, 8))
    return tm, tn, tk


def _ncl_tiles(n, c_in, length, c_out):
    """Tile sizes for the native-NCL kernels (x is (N, C_in, L))."""
    tn = _tile_n(c_out)
    tl = length if length <= 512 else 512
    bn = 1
    if length < 256 and n > 1:
        # Short sequences: pack several batch elements per block so each grid
        # step has real work (bn must divide n -> no batch masking needed).
        cap = max(1, min(8, 256 // max(length, 1)))
        for d in range(cap, 0, -1):
            if n % d == 0:
                bn = d
                break

    def _bytes(bn_, tl_, tn_):
        return 4 * (2 * bn_ * c_in * tl_ + 2 * tn_ * c_in + 2 * bn_ * tn_ * tl_)

    while _bytes(bn, tl, tn) > _BLOCK_BUDGET:
        if bn > 1:
            bn = 1
        elif tl > 128 and tl % 256 == 0:
            tl //= 2
        elif tn > 128 and tn % 128 == 0:
            tn -= 128
        else:
            # TODO(synk): tile c_in (K) in the NCL kernels for extremely wide layers.
            break
    return bn, tl, tn


# ----------------------------------------------------------------------------
# Row-major kernels: x (M, C_in) -> matmul+bias+ReLU (+BN affine).
# Grid (mi, ji, ki): M tile, C_out tile, C_in (reduction) tile.
# ----------------------------------------------------------------------------
def _rm_stats_kernel(x_ref, w_ref, b_ref, stats_ref, acc_ref, *,
                     m_total, tm, needs_mask, bf16):
    mi = pl.program_id(0)
    ki = pl.program_id(2)

    @pl.when(ki == 0)
    def _():
        acc_ref[...] = jnp.zeros_like(acc_ref)

    a = x_ref[...]
    wv = w_ref[...]
    if bf16:
        a = a.astype(jnp.bfloat16)
        wv = wv.astype(jnp.bfloat16)
    acc_ref[...] += jnp.dot(a, wv, preferred_element_type=jnp.float32)

    @pl.when(ki == pl.num_programs(2) - 1)
    def _():
        h = jnp.maximum(acc_ref[...] + b_ref[...], 0.0)
        if needs_mask:  # only emitted when M does not divide the tile
            row = mi * tm + lax.broadcasted_iota(jnp.int32, (tm, 1), 0)
            h = jnp.where(row < m_total, h, 0.0)
        s = jnp.sum(h, axis=0, keepdims=True)
        ss = jnp.sum(h * h, axis=0, keepdims=True)
        stats_ref[...] = jnp.concatenate([s, ss], axis=0)[None, :, :]


def _rm_apply_kernel(x_ref, w_ref, b_ref, *rest, affine, bf16):
    if affine:
        scale_ref, shift_ref, o_ref, acc_ref = rest
    else:
        o_ref, acc_ref = rest
    ki = pl.program_id(2)

    @pl.when(ki == 0)
    def _():
        acc_ref[...] = jnp.zeros_like(acc_ref)

    a = x_ref[...]
    wv = w_ref[...]
    if bf16:
        a = a.astype(jnp.bfloat16)
        wv = wv.astype(jnp.bfloat16)
    acc_ref[...] += jnp.dot(a, wv, preferred_element_type=jnp.float32)

    @pl.when(ki == pl.num_programs(2) - 1)
    def _():
        h = jnp.maximum(acc_ref[...] + b_ref[...], 0.0)
        if affine:
            h = h * scale_ref[...] + shift_ref[...]
        o_ref[...] = h.astype(o_ref.dtype)


def _rm_stats(x2d, w, b_row, *, tm, tn, tk, bf16):
    m, c_in = x2d.shape
    c_out = w.shape[1]
    nm, nj, nk = pl.cdiv(m, tm), pl.cdiv(c_out, tn), pl.cdiv(c_in, tk)
    kernel = functools.partial(_rm_stats_kernel, m_total=m, tm=tm,
                               needs_mask=(m % tm != 0), bf16=bf16)
    stats = pl.pallas_call(
        kernel,
        out_shape=jax.ShapeDtypeStruct((nm, 2, c_out), jnp.float32),
        grid_spec=pltpu.PrefetchScalarGridSpec(
            num_scalar_prefetch=0,
            grid=(nm, nj, nk),
            in_specs=[
                pl.BlockSpec((tm, tk), lambda i, j, k: (i, k)),
                pl.BlockSpec((tk, tn), lambda i, j, k: (k, j)),
                pl.BlockSpec((1, tn), lambda i, j, k: (0, j)),
            ],
            out_specs=pl.BlockSpec((1, 2, tn), lambda i, j, k: (i, 0, j)),
            scratch_shapes=[pltpu.VMEM((tm, tn), jnp.float32)],
        ),
        compiler_params=_compiler_params(("parallel", "parallel", "arbitrary")),
    )(x2d, w, b_row)
    return jnp.sum(stats, axis=0)                       # (2, c_out)


def _rm_apply(x2d, w, b_row, scale=None, shift=None, *,
              out_dtype, tm, tn, tk, bf16):
    m, c_in = x2d.shape
    c_out = w.shape[1]
    nm, nj, nk = pl.cdiv(m, tm), pl.cdiv(c_out, tn), pl.cdiv(c_in, tk)
    affine = scale is not None

    in_specs = [pl.BlockSpec((tm, tk), lambda i, j, k: (i, k)),
                pl.BlockSpec((tk, tn), lambda i, j, k: (k, j)),
                pl.BlockSpec((1, tn), lambda i, j, k: (0, j))]
    args = [x2d, w, b_row]
    if affine:
        vec = pl.BlockSpec((1, tn), lambda i, j, k: (0, j))
        in_specs += [vec, vec]
        args += [scale, shift]

    kernel = functools.partial(_rm_apply_kernel, affine=affine, bf16=bf16)
    cost = pl.CostEstimate(
        flops=2 * m * c_in * c_out, transcendentals=0,
        bytes_accessed=4 * (m * c_in + c_in * c_out + m * c_out))
    return pl.pallas_call(
        kernel,
        out_shape=jax.ShapeDtypeStruct((m, c_out), out_dtype),
        grid_spec=pltpu.PrefetchScalarGridSpec(
            num_scalar_prefetch=0,
            grid=(nm, nj, nk),
            in_specs=in_specs,
            out_specs=pl.BlockSpec((tm, tn), lambda i, j, k: (i, j)),
            scratch_shapes=[pltpu.VMEM((tm, tn), jnp.float32)],
        ),
        compiler_params=_compiler_params(("parallel", "parallel", "arbitrary")),
        cost_estimate=cost,
    )(*args)


# ----------------------------------------------------------------------------
# Native-NCL kernels: x (N, C_in, L); BN output (N, C_out, L); is_last output
# (N, L, C_out).  Grid (gj, gb, gl): C_out tile, batch block, L tile.  The
# weight tile is fetched once per gj; bn batch elements are packed per block.
# ----------------------------------------------------------------------------
def _ncl_stats_kernel(x_ref, wt_ref, b_ref, stats_ref, *,
                      bn, tl, l_total, needs_mask, bf16):
    gl = pl.program_id(2)
    wv = wt_ref[...]
    if bf16:
        wv = wv.astype(jnp.bfloat16)
    if needs_mask:  # only emitted when L does not divide the tile
        col = gl * tl + lax.broadcasted_iota(jnp.int32, (1, tl), 1)
        valid = col < l_total
    s = ss = None
    for bi in range(bn):
        xb = x_ref[bi]
        if bf16:
            xb = xb.astype(jnp.bfloat16)
        h = jnp.dot(wv, xb, preferred_element_type=jnp.float32)     # (tn, tl)
        h = jnp.maximum(h + b_ref[...], 0.0)
        if needs_mask:
            h = jnp.where(valid, h, 0.0)
        ps = jnp.sum(h, axis=1, keepdims=True)
        pss = jnp.sum(h * h, axis=1, keepdims=True)
        s = ps if s is None else s + ps
        ss = pss if ss is None else ss + pss
    stats_ref[...] = jnp.stack([s, ss], axis=0)[None]               # (1,2,tn,1)


def _ncl_apply_kernel(x_ref, wt_ref, b_ref, scale_ref, shift_ref, o_ref, *,
                      bn, bf16):
    wv = wt_ref[...]
    if bf16:
        wv = wv.astype(jnp.bfloat16)
    sc = scale_ref[...]
    sh = shift_ref[...]
    for bi in range(bn):
        xb = x_ref[bi]
        if bf16:
            xb = xb.astype(jnp.bfloat16)
        h = jnp.dot(wv, xb, preferred_element_type=jnp.float32)     # (tn, tl)
        h = jnp.maximum(h + b_ref[...], 0.0)
        o_ref[bi] = (h * sc + sh).astype(o_ref.dtype)


def _ncl_last_kernel(x_ref, w_ref, b_ref, o_ref, *, bn, bf16):
    wv = w_ref[...]
    if bf16:
        wv = wv.astype(jnp.bfloat16)
    for bi in range(bn):
        xb = x_ref[bi]                                              # (c_in, tl)
        if bf16:
            xb = xb.astype(jnp.bfloat16)
        # Contract c_in directly on the NCL-oriented tile -> (tl, tn); no
        # wrapper transpose of x, lane-dense output store in C_out.
        h = lax.dot_general(xb, wv, (((0,), (0,)), ((), ())),
                            preferred_element_type=jnp.float32)
        h = jnp.maximum(h + b_ref[...], 0.0)
        o_ref[bi] = h.astype(o_ref.dtype)


def _ncl_stats(x, wt, b_col, *, bn, tl, tn, bf16):
    n, c_in, length = x.shape
    c_out = wt.shape[0]
    ngb, ngl, nj = n // bn, pl.cdiv(length, tl), pl.cdiv(c_out, tn)
    kernel = functools.partial(_ncl_stats_kernel, bn=bn, tl=tl, l_total=length,
                               needs_mask=(length % tl != 0), bf16=bf16)
    stats = pl.pallas_call(
        kernel,
        out_shape=jax.ShapeDtypeStruct((ngb * ngl, 2, c_out, 1), jnp.float32),
        grid_spec=pltpu.PrefetchScalarGridSpec(
            num_scalar_prefetch=0,
            grid=(nj, ngb, ngl),
            in_specs=[
                pl.BlockSpec((bn, c_in, tl), lambda j, gb, gl: (gb, 0, gl)),
                pl.BlockSpec((tn, c_in), lambda j, gb, gl: (j, 0)),
                pl.BlockSpec((tn, 1), lambda j, gb, gl: (j, 0)),
            ],
            out_specs=pl.BlockSpec(
                (1, 2, tn, 1), lambda j, gb, gl: (gb * ngl + gl, 0, j, 0)),
        ),
        compiler_params=_compiler_params(("parallel", "parallel", "parallel")),
    )(x, wt, b_col)
    return jnp.sum(stats, axis=0)[:, :, 0]              # (2, c_out)


def _ncl_apply(x, wt, b_col, scale_col, shift_col, *, out_dtype, bn, tl, tn, bf16):
    n, c_in, length = x.shape
    c_out = wt.shape[0]
    ngb, ngl, nj = n // bn, pl.cdiv(length, tl), pl.cdiv(c_out, tn)
    kernel = functools.partial(_ncl_apply_kernel, bn=bn, bf16=bf16)
    cost = pl.CostEstimate(
        flops=2 * n * length * c_in * c_out, transcendentals=0,
        bytes_accessed=4 * (n * c_in * length + c_in * c_out + n * c_out * length))
    col = pl.BlockSpec((tn, 1), lambda j, gb, gl: (j, 0))
    return pl.pallas_call(
        kernel,
        out_shape=jax.ShapeDtypeStruct((n, c_out, length), out_dtype),
        grid_spec=pltpu.PrefetchScalarGridSpec(
            num_scalar_prefetch=0,
            grid=(nj, ngb, ngl),
            in_specs=[
                pl.BlockSpec((bn, c_in, tl), lambda j, gb, gl: (gb, 0, gl)),
                pl.BlockSpec((tn, c_in), lambda j, gb, gl: (j, 0)),
                col, col, col,
            ],
            out_specs=pl.BlockSpec((bn, tn, tl), lambda j, gb, gl: (gb, j, gl)),
        ),
        compiler_params=_compiler_params(("parallel", "parallel", "parallel")),
        cost_estimate=cost,
    )(x, wt, b_col, scale_col, shift_col)


def _ncl_last(x, w, b_row, *, out_dtype, bn, tl, tn, bf16):
    n, c_in, length = x.shape
    c_out = w.shape[1]
    ngb, ngl, nj = n // bn, pl.cdiv(length, tl), pl.cdiv(c_out, tn)
    kernel = functools.partial(_ncl_last_kernel, bn=bn, bf16=bf16)
    cost = pl.CostEstimate(
        flops=2 * n * length * c_in * c_out, transcendentals=0,
        bytes_accessed=4 * (n * c_in * length + c_in * c_out + n * length * c_out))
    return pl.pallas_call(
        kernel,
        out_shape=jax.ShapeDtypeStruct((n, length, c_out), out_dtype),
        grid_spec=pltpu.PrefetchScalarGridSpec(
            num_scalar_prefetch=0,
            grid=(nj, ngb, ngl),
            in_specs=[
                pl.BlockSpec((bn, c_in, tl), lambda j, gb, gl: (gb, 0, gl)),
                pl.BlockSpec((c_in, tn), lambda j, gb, gl: (0, j)),
                pl.BlockSpec((1, tn), lambda j, gb, gl: (0, j)),
            ],
            out_specs=pl.BlockSpec((bn, tl, tn), lambda j, gb, gl: (gb, gl, j)),
        ),
        compiler_params=_compiler_params(("parallel", "parallel", "parallel")),
        cost_estimate=cost,
    )(x, w, b_row)


# ----------------------------------------------------------------------------
# Wrapper
# ----------------------------------------------------------------------------
def _bn_scale_shift(s, ss, count, gamma, beta):
    mean = s / count
    var = jnp.maximum(ss / count - mean * mean, 0.0)     # biased variance
    inv = lax.rsqrt(var + BN_EPS)
    scale = gamma * inv
    shift = beta - mean * scale
    return scale, shift


def mylinear_forward(x, w, b, gamma, beta, *, is_last=False, use_bf16_matmul=False):
    """Forward pass of Mylinear (activation = ReLU, training-mode BatchNorm1d).

    x: (N, C_in, L) or (N, C_in)      (torch layout)
    w: (C_in, C_out)   b, gamma, beta: (C_out,)
    """
    c_in, c_out = w.shape
    out_dtype = x.dtype
    bf16 = use_bf16_matmul

    if x.ndim == 3:
        n, _, length = x.shape
        bn, tl, tn = _ncl_tiles(n, c_in, length, c_out)
        if is_last:
            # Native NCL contraction -> (N, L, C_out), no wrapper transpose.
            return _ncl_last(x, w, b.reshape(1, c_out),
                             out_dtype=out_dtype, bn=bn, tl=tl, tn=tn, bf16=bf16)
        wt = jnp.transpose(w)                            # (c_out, c_in), tiny
        b_col = b.reshape(c_out, 1)
        stats = _ncl_stats(x, wt, b_col, bn=bn, tl=tl, tn=tn, bf16=bf16)
        scale, shift = _bn_scale_shift(stats[0], stats[1], n * length, gamma, beta)
        return _ncl_apply(x, wt, b_col,
                          scale.reshape(c_out, 1), shift.reshape(c_out, 1),
                          out_dtype=out_dtype, bn=bn, tl=tl, tn=tn, bf16=bf16)

    # 2-D input (N, C_in).
    m = x.shape[0]
    tm, tn, tk = _rm_tiles(m, c_in, c_out)
    b_row = b.reshape(1, c_out)
    if is_last:
        return _rm_apply(x, w, b_row, out_dtype=out_dtype,
                         tm=tm, tn=tn, tk=tk, bf16=bf16)
    # TODO(synk): for wide layers (c_in >~ 1k) materialize h in pass 1 and make
    # pass 2 a pure elementwise BN kernel instead of recomputing the matmul.
    stats = _rm_stats(x, w, b_row, tm=tm, tn=tn, tk=tk, bf16=bf16)   # (2, c_out)
    scale, shift = _bn_scale_shift(stats[0], stats[1], m, gamma, beta)
    return _rm_apply(x, w, b_row,
                     scale.reshape(1, c_out), shift.reshape(1, c_out),
                     out_dtype=out_dtype, tm=tm, tn=tn, tk=tk, bf16=bf16)


# ----------------------------------------------------------------------------
# Pure-JAX reference mirroring the torch module (training-mode BN)
# ----------------------------------------------------------------------------
def _reference(x, w, b, gamma, beta, *, is_last=False):
    def bn(h, axes):
        mean = jnp.mean(h, axis=axes, keepdims=True)
        var = jnp.mean((h - mean) ** 2, axis=axes, keepdims=True)
        shape = [1] * h.ndim
        shape[1] = h.shape[1]
        return gamma.reshape(shape) * (h - mean) * lax.rsqrt(var + BN_EPS) \
            + beta.reshape(shape)

    if x.ndim == 3:
        h = jnp.einsum("ncl,co->nlo", x, w) + b          # (N, L, C_out)
        h = jnp.maximum(h, 0.0)
        if is_last:
            return h
        return bn(jnp.transpose(h, (0, 2, 1)), axes=(0, 2))   # (N, C_out, L)
    h = jnp.maximum(x @ w + b, 0.0)
    if is_last:
        return h
    return bn(h, axes=(0,))


if __name__ == "__main__":
    in_channels, out_channels = 32, 64
    batch, length = 2, 8

    key = jax.random.PRNGKey(0)
    kx, kw, kb, kg, kbeta, kx2 = jax.random.split(key, 6)

    # Deterministic synthetic parameters (no checkpoint load).
    w = (jax.random.normal(kw, (in_channels, out_channels), jnp.float32)
         * (1.0 / jnp.sqrt(in_channels)))
    b = jax.random.normal(kb, (out_channels,), jnp.float32) * 0.1
    gamma = 1.0 + 0.1 * jax.random.normal(kg, (out_channels,), jnp.float32)
    beta = 0.1 * jax.random.normal(kbeta, (out_channels,), jnp.float32)

    # 3-D path (BN): x is (N, C_in, L) as in torch.
    x3 = jax.random.normal(kx, (batch, in_channels, length), jnp.float32)
    out3 = jax.block_until_ready(mylinear_forward(x3, w, b, gamma, beta, is_last=False))
    ref3 = _reference(x3, w, b, gamma, beta, is_last=False)
    assert out3.shape == (batch, out_channels, length)
    assert jnp.allclose(out3, ref3, atol=1e-4, rtol=1e-4)

    # 2-D path (BN): x is (N, C_in).
    x2 = jax.random.normal(kx2, (batch * length, in_channels), jnp.float32)
    out2 = jax.block_until_ready(mylinear_forward(x2, w, b, gamma, beta, is_last=False))
    ref2 = _reference(x2, w, b, gamma, beta, is_last=False)
    assert out2.shape == (batch * length, out_channels)
    assert jnp.allclose(out2, ref2, atol=1e-4, rtol=1e-4)

    # 3-D path, is_last=True (no BN, torch returns NLC).
    out_last3 = jax.block_until_ready(
        mylinear_forward(x3, w, b, gamma, beta, is_last=True))
    ref_last3 = _reference(x3, w, b, gamma, beta, is_last=True)
    assert out_last3.shape == (batch, length, out_channels)
    assert jnp.allclose(out_last3, ref_last3, atol=1e-4, rtol=1e-4)

    # 2-D path, is_last=True.
    out_last2 = jax.block_until_ready(
        mylinear_forward(x2, w, b, gamma, beta, is_last=True))
    ref_last2 = _reference(x2, w, b, gamma, beta, is_last=True)
    assert out_last2.shape == (batch * length, out_channels)
    assert jnp.allclose(out_last2, ref_last2, atol=1e-4, rtol=1e-4)

    print("KERNEL_OK")
</pallas_src>

<mosaic_0001>
module attributes {stable_mosaic.version = 11 : i64} {
  func.func @_ncl_stats_kernel(%arg0: i32, %arg1: i32, %arg2: i32, %arg3: memref<2x32x8xf32, #tpu.memory_space<vmem>>, %arg4: memref<64x32xf32, #tpu.memory_space<vmem>>, %arg5: memref<64x1xf32, #tpu.memory_space<vmem>>, %arg6: memref<1x2x64x1xf32, #tpu.memory_space<vmem>>) attributes {dimension_semantics = [#tpu.dimension_semantics<parallel>, #tpu.dimension_semantics<parallel>, #tpu.dimension_semantics<parallel>], iteration_bounds = array<i64: 1, 1, 1>, scalar_prefetch = 0 : i64, scratch_operands = 0 : i64, tpu.core_type = #tpu.core_type<tc>, window_params = [{transform_indices = @transform_0, window_bounds = array<i64: 2, 32, 8>}, {transform_indices = @transform_1, window_bounds = array<i64: 64, 32>}, {transform_indices = @transform_2, window_bounds = array<i64: 64, 1>}, {transform_indices = @transform_3, window_bounds = array<i64: 1, 2, 64, 1>}]} {
    %c0 = arith.constant 0 : index
    %c0_0 = arith.constant 0 : index
    %0 = vector.load %arg4[%c0, %c0_0] : memref<64x32xf32, #tpu.memory_space<vmem>>, vector<64x32xf32>
    %c0_1 = arith.constant 0 : index
    %c0_2 = arith.constant 0 : index
    %c0_3 = arith.constant 0 : index
    %1 = vector.load %arg3[%c0_1, %c0_2, %c0_3] : memref<2x32x8xf32, #tpu.memory_space<vmem>>, vector<1x32x8xf32>
    %2 = vector.shape_cast %1 : vector<1x32x8xf32> to vector<32x8xf32>
    %cst = arith.constant dense<0.000000e+00> : vector<64x8xf32>
    %3 = tpu.matmul %0, %2, %cst {dimension_numbers = #tpu.dot_dimension_numbers<[1], [0], [0], [1], [0, 0, 1, 1], [], []>} : vector<64x32xf32>, vector<32x8xf32>, vector<64x8xf32> -> vector<64x8xf32>
    %c0_4 = arith.constant 0 : index
    %c0_5 = arith.constant 0 : index
    %4 = vector.load %arg5[%c0_4, %c0_5] : memref<64x1xf32, #tpu.memory_space<vmem>>, vector<64x1xf32>
    %5 = vector.broadcast %4 : vector<64x1xf32> to vector<64x8xf32>
    %6 = arith.addf %3, %5 : vector<64x8xf32>
    %cst_6 = arith.constant 0.000000e+00 : f32
    %7 = vector.broadcast %cst_6 : f32 to vector<64x8xf32>
    %8 = arith.maximumf %6, %7 : vector<64x8xf32>
    %cst_7 = arith.constant dense<0.000000e+00> : vector<64xf32>
    %9 = vector.multi_reduction <add>, %8, %cst_7 [1] : vector<64x8xf32> to vector<64xf32>
    %10 = vector.shape_cast %9 : vector<64xf32> to vector<64x1xf32>
    %11 = arith.mulf %8, %8 : vector<64x8xf32>
    %cst_8 = arith.constant dense<0.000000e+00> : vector<64xf32>
    %12 = vector.multi_reduction <add>, %11, %cst_8 [1] : vector<64x8xf32> to vector<64xf32>
    %13 = vector.shape_cast %12 : vector<64xf32> to vector<64x1xf32>
    %c1 = arith.constant 1 : index
    %c0_9 = arith.constant 0 : index
    %c0_10 = arith.constant 0 : index
    %14 = vector.load %arg3[%c1, %c0_9, %c0_10] : memref<2x32x8xf32, #tpu.memory_space<vmem>>, vector<1x32x8xf32>
    %15 = vector.shape_cast %14 : vector<1x32x8xf32> to vector<32x8xf32>
    %cst_11 = arith.constant dense<0.000000e+00> : vector<64x8xf32>
    %16 = tpu.matmul %0, %15, %cst_11 {dimension_numbers = #tpu.dot_dimension_numbers<[1], [0], [0], [1], [0, 0, 1, 1], [], []>} : vector<64x32xf32>, vector<32x8xf32>, vector<64x8xf32> -> vector<64x8xf32>
    %c0_12 = arith.constant 0 : index
    %c0_13 = arith.constant 0 : index
    %17 = vector.load %arg5[%c0_12, %c0_13] : memref<64x1xf32, #tpu.memory_space<vmem>>, vector<64x1xf32>
    %18 = vector.broadcast %17 : vector<64x1xf32> to vector<64x8xf32>
    %19 = arith.addf %16, %18 : vector<64x8xf32>
    %cst_14 = arith.constant 0.000000e+00 : f32
    %20 = vector.broadcast %cst_14 : f32 to vector<64x8xf32>
    %21 = arith.maximumf %19, %20 : vector<64x8xf32>
    %cst_15 = arith.constant dense<0.000000e+00> : vector<64xf32>
    %22 = vector.multi_reduction <add>, %21, %cst_15 [1] : vector<64x8xf32> to vector<64xf32>
    %23 = vector.shape_cast %22 : vector<64xf32> to vector<64x1xf32>
    %24 = arith.mulf %21, %21 : vector<64x8xf32>
    %cst_16 = arith.constant dense<0.000000e+00> : vector<64xf32>
    %25 = vector.multi_reduction <add>, %24, %cst_16 [1] : vector<64x8xf32> to vector<64xf32>
    %26 = vector.shape_cast %25 : vector<64xf32> to vector<64x1xf32>
    %27 = arith.addf %10, %23 : vector<64x1xf32>
    %28 = arith.addf %13, %26 : vector<64x1xf32>
    %29 = vector.shape_cast %27 : vector<64x1xf32> to vector<1x64x1xf32>
    %30 = vector.shape_cast %28 : vector<64x1xf32> to vector<1x64x1xf32>
    %31 = tpu.concatenate %29, %30 in 0 : vector<1x64x1xf32>, vector<1x64x1xf32> -> vector<2x64x1xf32>
    %32 = vector.shape_cast %31 : vector<2x64x1xf32> to vector<1x2x64x1xf32>
    %c0_17 = arith.constant 0 : index
    %c0_18 = arith.constant 0 : index
    %c0_19 = arith.constant 0 : index
    %c0_20 = arith.constant 0 : index
    %33 = vector.load %arg6[%c0_17, %c0_18, %c0_19, %c0_20] : memref<1x2x64x1xf32, #tpu.memory_space<vmem>>, vector<1x2x64x1xf32>
    tpu.vector_store %arg6[%c0_17, %c0_18, %c0_19, %c0_20], %32 {strides = array<i32>} : memref<1x2x64x1xf32, #tpu.memory_space<vmem>>, vector<1x2x64x1xf32>,
    return
  }
  func.func @transform_0(%arg0: i32, %arg1: i32, %arg2: i32) -> (i32, i32, i32) {
    %c0_i32 = arith.constant 0 : i32
    %c0_i32_0 = arith.constant 0 : i32
    return %arg1, %c0_i32, %arg2 : i32, i32, i32
  }
  func.func @transform_1(%arg0: i32, %arg1: i32, %arg2: i32) -> (i32, i32) {
    %c0_i32 = arith.constant 0 : i32
    %c0_i32_0 = arith.constant 0 : i32
    return %arg0, %c0_i32 : i32, i32
  }
  func.func @transform_2(%arg0: i32, %arg1: i32, %arg2: i32) -> (i32, i32) {
    %c0_i32 = arith.constant 0 : i32
    %c0_i32_0 = arith.constant 0 : i32
    return %arg0, %c0_i32 : i32, i32
  }
  func.func @transform_3(%arg0: i32, %arg1: i32, %arg2: i32) -> (i32, i32, i32, i32) {
    %c1_i32 = arith.constant 1 : i32
    %0 = arith.muli %arg1, %c1_i32 : i32
    %1 = arith.addi %0, %arg2 : i32
    %c0_i32 = arith.constant 0 : i32
    %c0_i32_0 = arith.constant 0 : i32
    %c0_i32_1 = arith.constant 0 : i32
    return %1, %c0_i32, %arg0, %c0_i32_0 : i32, i32, i32, i32
  }
}

</mosaic_0001>

<bundles_post_ra>
// kernel: tpu_custom_call.1
= control target key start
LH: loop header
LB: loop body
LE: loop exit
PB: predicated region body
PF: predicated region fallthrough
CT: control target
= control target key end

     0   :  { %vm87_vm0 = vcmask 261120   ;;  %v617_v3 = vmov 0   ;;  %vm225_vm1 = vcmask 64512   ;;  %vm472_vm2 = vcmask 7168   ;;  %s844_s0 = inlined_call_operand.vmem [shape: f32[2,32,8], index: 0, kind: input, shape index: {}]   ;;  %s845_s1 = inlined_call_operand.vmem [shape: f32[64,32], index: 1, kind: input, shape index: {}]   ;;  %s846_s2 = inlined_call_operand.vmem [shape: f32[64,1], index: 2, kind: input, shape index: {}]   ;;  %s847_s3 = inlined_call_operand.vmem [shape: f32[1,2,64,1], index: 3, kind: output, shape index: {}]  }
   0x1   :  { %v35_v0 = vld [vmem:[%s844_s0] sm:$0xff]  ;;  %v36_v1 = vld [vmem:[%s844_s0 + $0x8] sm:$0xff]  ;;  %615 = vset.pattern.permute.xlu0 %v617_v3  ;;  %616 = vset.pattern.permute.xlu1 %v617_v3  ;;  %v37_v6 = vld [vmem:[%s844_s0 + $0x10] sm:$0xff] }
   0x2   :  { %v522_v2 = vld [vmem:[%s844_s0 + $0x20] sm:$0xff]  ;;  %v598_v4 = vpack.c.bf16 %v36_v1, %v35_v0  ;;  %v523_v5 = vld [vmem:[%s844_s0 + $0x28] sm:$0xff]  ;;  %v38_v7 = vld [vmem:[%s844_s0 + $0x18] sm:$0xff] }
   0x3   :  { %v606_v8 = vpack.c.bf16 %v523_v5, %v522_v2  ;;  %v602_v9 = vpack.c.bf16 %v38_v7, %v37_v6  ;;  %v524_v10 = vld [vmem:[%s844_s0 + $0x30] sm:$0xff]  ;;  %v525_v11 = vld [vmem:[%s844_s0 + $0x38] sm:$0xff]  ;;  %v27_v12 = vld [vmem:[%s845_s1] sm:$0xff] }
   0x4   :  { %599 = vmatprep.subr.bf16.mxu0 %v598_v4  ;;  %v610_v13 = vpack.c.bf16 %v525_v11, %v524_v10  ;;  %566 = vmatprep.mubr.msk.f32.mxu0 %vm87_vm0, %v27_v12  ;;  %v39_v14 = vld [vmem:[%s846_s2] sm:$0xff]  ;;  %v41_v15 = vld [vmem:[%s846_s2 + $0x10] sm:$0xff]  ;;  %v28_v16 = vld [vmem:[%s845_s1 + $0x8] sm:$0xff] }
   0x5   :  { %607 = vmatprep.subr.bf16.mxu1 %v606_v8  ;;  %601 = vmatpush3.bf16.msra.mxu0 %v598_v4  ;;  %v40_v17 = vld [vmem:[%s846_s2 + $0x8] sm:$0xff]  ;;  %v29_v18 = vld [vmem:[%s845_s1 + $0x10] sm:$0xff]  ;;  %v42_v19 = vld [vmem:[%s846_s2 + $0x18] sm:$0xff] }
   0x6   :  { %609 = vmatpush3.bf16.msra.mxu1 %v606_v8  ;;  %603 = vmatprep.subr.bf16.mxu0 %v602_v9  ;;  %v30_v20 = vld [vmem:[%s845_s1 + $0x18] sm:$0xff]  ;;  %v43_v21 = vld [vmem:[%s846_s2 + $0x20] sm:$0xff]  ;;  %v44_v23 = vld [vmem:[%s846_s2 + $0x28] sm:$0xff] }
   0x7   :  { %611 = vmatprep.subr.bf16.mxu1 %v610_v13  ;;  %586 = vmatprep.mubr.msk.f32.mxu1 %vm87_vm0, %v27_v12  ;;  %v31_v22 = vld [vmem:[%s845_s1 + $0x20] sm:$0xff]  ;;  %v32_v24 = vld [vmem:[%s845_s1 + $0x28] sm:$0xff]  ;;  %v45_v25 = vld [vmem:[%s846_s2 + $0x30] sm:$0xff] }
   0x8   :  { %49 = vperm.xlu0 %615, %v39_v14   ;;  %59 = vperm.xlu1 %616, %v41_v15   ;;  %v33_v26 = vld [vmem:[%s845_s1 + $0x30] sm:$0xff]  ;;  %v46_v27 = vld [vmem:[%s846_s2 + $0x38] sm:$0xff] }
   0x9   :  { %605 = vmatpush3.bf16.msra.mxu0 %v602_v9  ;;  %v34_v28 = vld [vmem:[%s845_s1 + $0x38] sm:$0xff] }
   0xa   :  { %613 = vmatpush3.bf16.msra.mxu1 %v610_v13 }
   0xc   :  { %567 = vmatmul.mubr.msk.f32.vlgmr.msra.gmra.mrb[0].mxu0 %vm87_vm0, %v28_v16  ;;  %54 = vperm.xlu0 %615, %v40_v17  }
   0xd   :  { %587 = vmatmul.mubr.msk.f32.vlgmr.msra.gmra.mrb[0].mxu1 %vm87_vm0, %v28_v16  ;;  %569 = vmatprep.mubr.msk.f32.mxu0 %vm87_vm0, %v29_v18 }
   0xe   :  { %589 = vmatprep.mubr.msk.f32.mxu1 %vm87_vm0, %v29_v18  ;;  %64 = vperm.xlu1 %616, %v42_v19  }
  0x10   :  { %570 = vmatmul.mubr.msk.f32.gmra.mrb[2].mxu0 %vm87_vm0, %v30_v20  ;;  %69 = vperm.xlu0 %615, %v43_v21  }
  0x11   :  { %590 = vmatmul.mubr.msk.f32.gmra.mrb[2].mxu1 %vm87_vm0, %v30_v20  ;;  %572 = vmatprep.mubr.msk.f32.mxu0 %vm87_vm0, %v31_v22 }
  0x12   :  { %592 = vmatprep.mubr.msk.f32.mxu1 %vm87_vm0, %v31_v22  ;;  %74 = vperm.xlu1 %616, %v44_v23  }
  0x14   :  { %573 = vmatmul.mubr.msk.f32.gmra.mrb[4].mxu0 %vm87_vm0, %v32_v24  ;;  %79 = vperm.xlu0 %615, %v45_v25  }
  0x15   :  { %593 = vmatmul.mubr.msk.f32.gmra.mrb[4].mxu1 %vm87_vm0, %v32_v24  ;;  %575 = vmatprep.mubr.msk.f32.mxu0 %vm87_vm0, %v33_v26 }
  0x16   :  { %595 = vmatprep.mubr.msk.f32.mxu1 %vm87_vm0, %v33_v26  ;;  %84 = vperm.xlu1 %616, %v46_v27  }
  0x18   :  { %576 = vmatmul.mubr.msk.f32.gmra.mrb[6].mxu0 %vm87_vm0, %v34_v28 }
  0x19   :  { %596 = vmatmul.mubr.msk.f32.gmra.mrb[6].mxu1 %vm87_vm0, %v34_v28 }
  0x87   :  { %v60_v29 = vpop.permute.xlu1 %59  ;;  %v50_v30 = vpop.permute.xlu0 %49 }
  0x8b   :  { %v55_v32 = vpop.permute.xlu0 %54 }
  0x8d   :  { %v65_v31 = vpop.permute.xlu1 %64 }
  0x8f   :  { %v70_v21 = vpop.permute.xlu0 %69 }
  0x91   :  { %v726_v44 = vpop.permute.xlu1 %74 }
  0x95   :  { %v734_v60 = vpop.permute.xlu1 %84 }
  0xdf   :  { %v568_v33 = vpop.f32.mrb[0].mxu0 }
  0xe0   :  { %v184_v34 = vadd.f32 %v568_v33, %v55_v32  ;;  %v588_v35 = vpop.f32.mrb[0].mxu1  ;;  %v178_v36 = vpop.f32.mrb[1].mxu0 }
  0xe1   :  { %v359_v37 = vadd.f32 %v588_v35, %v55_v32  ;;  %v179_v38 = vadd.f32 %v178_v36, %v50_v30  ;;  %v353_v39 = vpop.f32.mrb[1].mxu1 }
  0xe2   :  { %v218_v40 = vmax.f32 %v184_v34, 0.0  ;;  %v354_v41 = vadd.f32 %v353_v39, %v50_v30 }
  0xe3   :  { %v393_v42 = vmax.f32 %v359_v37, 0.0  ;;  %v571_v43 = vpop.f32.mrb[2].mxu0  ;;  %v217_v45 = vmax.f32 %v179_v38, 0.0 }
  0xe4   :  { %v392_v46 = vmax.f32 %v354_v41, 0.0  ;;  %v591_v47 = vpop.f32.mrb[2].mxu1  ;;  %v229_v48 = vsel %vm225_vm1, %v218_v40, 0.0  ;;  %v188_v49 = vpop.f32.mrb[3].mxu0  ;;  %v251_v59 = vmul.f32 %v218_v40, %v218_v40  ;;  %v194_v4 = vadd.f32 %v571_v43, %v65_v31 }
  0xe5   :  { %v403_v50 = vsel %vm225_vm1, %v393_v42, 0.0  ;;  %230 = vadd.xlane.f32.xlu1 %v229_v48  ;;  %v363_v51 = vpop.f32.mrb[3].mxu1  ;;  %v250_v56 = vmul.f32 %v217_v45, %v217_v45  ;;  %v226_v58 = vsel %vm225_vm1, %v217_v45, 0.0  ;;  %v189_v62 = vadd.f32 %v188_v49, %v60_v29 }
  0xe6   :  { %404 = vadd.xlane.f32.xlu0 %v403_v50  ;;  %v400_v55 = vsel %vm225_vm1, %v392_v46, 0.0  ;;  %v364_v63 = vadd.f32 %v363_v51, %v60_v29  ;;  %v424_v3 = vmul.f32 %v392_v46, %v392_v46  ;;  %v261_v7 = vsel %vm225_vm1, %v251_v59, 0.0 }
  0xe7   :  { %v574_v52 = vpop.f32.mrb[4].mxu0  ;;  %v258_v2 = vsel %vm225_vm1, %v250_v56, 0.0  ;;  %v425_v8 = vmul.f32 %v393_v42, %v393_v42  ;;  %v219_v9 = vmax.f32 %v189_v62, 0.0  ;;  %v369_v12 = vadd.f32 %v591_v47, %v65_v31  ;;  %v80_v42 = vpop.permute.xlu0 %79 }
  0xe8   :  { %v730_v53 = vpop.f32.mrb[4].mxu1  ;;  %v198_v54 = vpop.f32.mrb[5].mxu0  ;;  %v394_v10 = vmax.f32 %v364_v63, 0.0  ;;  %v432_v11 = vsel %vm225_vm1, %v424_v3, 0.0  ;;  %v220_v13 = vmax.f32 %v194_v4, 0.0  ;;  %v204_v34 = vadd.f32 %v574_v52, %v726_v44 }
  0xe9   :  { %v373_v57 = vpop.f32.mrb[5].mxu1  ;;  %401 = vadd.xlane.f32.xlu1 %v400_v55  ;;  %v435_v15 = vsel %vm225_vm1, %v425_v8, 0.0  ;;  %v252_v17 = vmul.f32 %v219_v9, %v219_v9  ;;  %v395_v18 = vmax.f32 %v369_v12, 0.0  ;;  %v199_v23 = vadd.f32 %v198_v54, %v70_v21 }
  0xea   :  { %227 = vadd.xlane.f32.xlu0 %v226_v58  ;;  %v406_v16 = vsel %vm225_vm1, %v394_v10, 0.0  ;;  %v235_v19 = vsel %vm225_vm1, %v220_v13, 0.0  ;;  %v426_v25 = vmul.f32 %v394_v10, %v394_v10  ;;  %v374_v28 = vadd.f32 %v373_v57, %v70_v21 }
  0xeb   :  { %v736_v61 = vpop.f32.mrb[6].mxu0  ;;  %v264_v24 = vsel %vm225_vm1, %v252_v17, 0.0  ;;  %v409_v26 = vsel %vm225_vm1, %v395_v18, 0.0  ;;  %v221_v27 = vmax.f32 %v199_v23, 0.0  ;;  %v232_v30 = vsel %vm225_vm1, %v219_v9, 0.0 }
  0xec   :  { %v597_v0 = vpop.f32.mrb[6].mxu1  ;;  %v208_v1 = vpop.f32.mrb[7].mxu0  ;;  %v438_v29 = vsel %vm225_vm1, %v426_v25, 0.0  ;;  %v253_v31 = vmul.f32 %v220_v13, %v220_v13  ;;  %v396_v32 = vmax.f32 %v374_v28, 0.0  ;;  %v427_v36 = vmul.f32 %v395_v18, %v395_v18 }
  0xed   :  { %v389_v5 = vadd.f32 %v597_v0, %v734_v60  ;;  %v383_v6 = vpop.f32.mrb[7].mxu1  ;;  %259 = vadd.xlane.f32.xlu1 %v258_v2  ;;  %v238_v33 = vsel %vm225_vm1, %v221_v27, 0.0  ;;  %v254_v38 = vmul.f32 %v221_v27, %v221_v27  ;;  %v222_v39 = vmax.f32 %v204_v34, 0.0 }
  0xee   :  { %262 = vadd.xlane.f32.xlu0 %v261_v7  ;;  %v267_v35 = vsel %vm225_vm1, %v253_v31, 0.0  ;;  %v412_v37 = vsel %vm225_vm1, %v396_v32, 0.0  ;;  %v379_v40 = vadd.f32 %v730_v53, %v726_v44  ;;  %v441_v41 = vsel %vm225_vm1, %v427_v36, 0.0 }
  0xef   :  { %v742_v14 = vmax.f32 %v389_v5, 0.0  ;;  %v209_v43 = vadd.f32 %v208_v1, %v80_v42  ;;  %v270_v45 = vsel %vm225_vm1, %v254_v38, 0.0  ;;  %v428_v46 = vmul.f32 %v396_v32, %v396_v32 }
  0xf0   :  { %v397_v47 = vmax.f32 %v379_v40, 0.0  ;;  %v241_v48 = vsel %vm225_vm1, %v222_v39, 0.0  ;;  %v384_v50 = vadd.f32 %v383_v6, %v80_v42  ;;  %v255_v52 = vmul.f32 %v222_v39, %v222_v39 }
  0xf1   :  { %433 = vadd.xlane.f32.xlu1 %v432_v11  ;;  %v431_v20 = vmul.f32 %v742_v14, %v742_v14  ;;  %v223_v49 = vmax.f32 %v209_v43, 0.0  ;;  %v444_v51 = vsel %vm225_vm1, %v428_v46, 0.0  ;;  %v214_v55 = vadd.f32 %v736_v61, %v734_v60 }
  0xf2   :  { %436 = vadd.xlane.f32.xlu0 %v435_v15  ;;  %v415_v44 = vsel %vm225_vm1, %v397_v47, 0.0  ;;  %v398_v53 = vmax.f32 %v384_v50, 0.0  ;;  %v273_v56 = vsel %vm225_vm1, %v255_v52, 0.0  ;;  %v429_v57 = vmul.f32 %v397_v47, %v397_v47 }
  0xf3   :  { %v750_v22 = vsel %vm225_vm1, %v431_v20, 0.0  ;;  %v244_v54 = vsel %vm225_vm1, %v223_v49, 0.0  ;;  %v256_v59 = vmul.f32 %v223_v49, %v223_v49  ;;  %v224_v62 = vmax.f32 %v214_v55, 0.0 }
  0xf4   :  { %v418_v58 = vsel %vm225_vm1, %v398_v53, 0.0  ;;  %v447_v63 = vsel %vm225_vm1, %v429_v57, 0.0  ;;  %v430_v1 = vmul.f32 %v398_v53, %v398_v53  ;;  %v421_v61 = vsel %vm225_vm1, %v742_v14, 0.0 }
  0xf5   :  { %407 = vadd.xlane.f32.xlu1 %v406_v16  ;;  %v276_v0 = vsel %vm225_vm1, %v256_v59, 0.0  ;;  %v247_v2 = vsel %vm225_vm1, %v224_v62, 0.0  ;;  %v257_v3 = vmul.f32 %v224_v62, %v224_v62 }
  0xf6   :  { %236 = vadd.xlane.f32.xlu0 %v235_v19  ;;  %v450_v60 = vsel %vm225_vm1, %v430_v1, 0.0 }
  0xf7   :  { %v279_v4 = vsel %vm225_vm1, %v257_v3, 0.0 }
  0xf9   :  { %265 = vadd.xlane.f32.xlu1 %v264_v24 }
  0xfa   :  { %410 = vadd.xlane.f32.xlu0 %v409_v26 }
  0xfd   :  { %439 = vadd.xlane.f32.xlu1 %v438_v29 }
  0xfe   :  { %233 = vadd.xlane.f32.xlu0 %v232_v30 }
 0x101   :  { %239 = vadd.xlane.f32.xlu1 %v238_v33 }
 0x102   :  { %268 = vadd.xlane.f32.xlu0 %v267_v35 }
 0x105   :  { %413 = vadd.xlane.f32.xlu1 %v412_v37 }
 0x106   :  { %442 = vadd.xlane.f32.xlu0 %v441_v41 }
 0x109   :  { %271 = vadd.xlane.f32.xlu1 %v270_v45 }
 0x10a   :  { %242 = vadd.xlane.f32.xlu0 %v241_v48 }
 0x10d   :  { %445 = vadd.xlane.f32.xlu1 %v444_v51 }
 0x10e   :  { %416 = vadd.xlane.f32.xlu0 %v415_v44 }
 0x111   :  { %245 = vadd.xlane.f32.xlu1 %v244_v54 }
 0x112   :  { %274 = vadd.xlane.f32.xlu0 %v273_v56 }
 0x115   :  { %419 = vadd.xlane.f32.xlu1 %v418_v58 }
 0x116   :  { %448 = vadd.xlane.f32.xlu0 %v447_v63 }
 0x119   :  { %277 = vadd.xlane.f32.xlu1 %v276_v0 }
 0x11a   :  { %248 = vadd.xlane.f32.xlu0 %v247_v2 }
 0x11d   :  { %451 = vadd.xlane.f32.xlu1 %v450_v60 }
 0x11e   :  { %422 = vadd.xlane.f32.xlu0 %v421_v61 }
 0x122   :  { %280 = vadd.xlane.f32.xlu0 %v279_v4 }
 0x126   :  { %454 = vadd.xlane.f32.xlu0 %v750_v22 }
 0x172   :  { %v231_v5 = vpop.xlane.xlu1 %230 }
 0x173   :  { %v405_v6 = vpop.xlane.xlu0 %404 }
 0x174   :  { %v457_v7 = vadd.f32 %v405_v6, %v231_v5 }
 0x176   :  { %474 = vst.msk [vmem:[%s847_s3 + $0x8] sm:$0xff] %vm472_vm2, %v457_v7  ;;  %v402_v8 = vpop.xlane.xlu1 %401 }
 0x177   :  { %v228_v9 = vpop.xlane.xlu0 %227 }
 0x178   :  { %v456_v10 = vadd.f32 %v402_v8, %v228_v9 }
 0x17a   :  { %473 = vst.msk [vmem:[%s847_s3] sm:$0xff] %vm472_vm2, %v456_v10  ;;  %v260_v11 = vpop.xlane.xlu1 %259 }
 0x17b   :  { %v263_v12 = vpop.xlane.xlu0 %262 }
 0x17e   :  { %v434_v13 = vpop.xlane.xlu1 %433 }
 0x17f   :  { %v464_v14 = vadd.f32 %v434_v13, %v260_v11  ;;  %v437_v15 = vpop.xlane.xlu0 %436 }
 0x180   :  { %v465_v16 = vadd.f32 %v437_v15, %v263_v12 }
 0x181   :  { %481 = vst.msk [vmem:[%s847_s3 + $0x40] sm:$0xff] %vm472_vm2, %v464_v14 }
 0x182   :  { %482 = vst.msk [vmem:[%s847_s3 + $0x48] sm:$0xff] %vm472_vm2, %v465_v16  ;;  %v408_v17 = vpop.xlane.xlu1 %407 }
 0x183   :  { %v237_v18 = vpop.xlane.xlu0 %236 }
 0x186   :  { %v266_v19 = vpop.xlane.xlu1 %265 }
 0x187   :  { %v411_v20 = vpop.xlane.xlu0 %410 }
 0x188   :  { %v459_v21 = vadd.f32 %v411_v20, %v237_v18 }
 0x18a   :  { %476 = vst.msk [vmem:[%s847_s3 + $0x18] sm:$0xff] %vm472_vm2, %v459_v21  ;;  %v440_v22 = vpop.xlane.xlu1 %439 }
 0x18b   :  { %v466_v23 = vadd.f32 %v440_v22, %v266_v19  ;;  %v234_v24 = vpop.xlane.xlu0 %233 }
 0x18c   :  { %v458_v25 = vadd.f32 %v408_v17, %v234_v24 }
 0x18d   :  { %483 = vst.msk [vmem:[%s847_s3 + $0x50] sm:$0xff] %vm472_vm2, %v466_v23 }
 0x18e   :  { %475 = vst.msk [vmem:[%s847_s3 + $0x10] sm:$0xff] %vm472_vm2, %v458_v25  ;;  %v240_v26 = vpop.xlane.xlu1 %239 }
 0x18f   :  { %v269_v27 = vpop.xlane.xlu0 %268 }
 0x192   :  { %v414_v28 = vpop.xlane.xlu1 %413 }
 0x193   :  { %v460_v29 = vadd.f32 %v414_v28, %v240_v26  ;;  %v443_v30 = vpop.xlane.xlu0 %442 }
 0x194   :  { %v467_v31 = vadd.f32 %v443_v30, %v269_v27 }
 0x195   :  { %477 = vst.msk [vmem:[%s847_s3 + $0x20] sm:$0xff] %vm472_vm2, %v460_v29 }
 0x196   :  { %484 = vst.msk [vmem:[%s847_s3 + $0x58] sm:$0xff] %vm472_vm2, %v467_v31  ;;  %v272_v32 = vpop.xlane.xlu1 %271 }
 0x197   :  { %v243_v33 = vpop.xlane.xlu0 %242 }
 0x19a   :  { %v446_v34 = vpop.xlane.xlu1 %445 }
 0x19b   :  { %v468_v35 = vadd.f32 %v446_v34, %v272_v32  ;;  %v417_v36 = vpop.xlane.xlu0 %416 }
 0x19c   :  { %v461_v37 = vadd.f32 %v417_v36, %v243_v33 }
 0x19d   :  { %485 = vst.msk [vmem:[%s847_s3 + $0x60] sm:$0xff] %vm472_vm2, %v468_v35 }
 0x19e   :  { %478 = vst.msk [vmem:[%s847_s3 + $0x28] sm:$0xff] %vm472_vm2, %v461_v37  ;;  %v246_v38 = vpop.xlane.xlu1 %245 }
 0x19f   :  { %v275_v39 = vpop.xlane.xlu0 %274 }
 0x1a2   :  { %v420_v40 = vpop.xlane.xlu1 %419 }
 0x1a3   :  { %v462_v41 = vadd.f32 %v420_v40, %v246_v38  ;;  %v449_v42 = vpop.xlane.xlu0 %448 }
 0x1a4   :  { %v469_v43 = vadd.f32 %v449_v42, %v275_v39 }
 0x1a5   :  { %479 = vst.msk [vmem:[%s847_s3 + $0x30] sm:$0xff] %vm472_vm2, %v462_v41 }
 0x1a6   :  { %486 = vst.msk [vmem:[%s847_s3 + $0x68] sm:$0xff] %vm472_vm2, %v469_v43  ;;  %v278_v45 = vpop.xlane.xlu1 %277 }
 0x1a7   :  { %v249_v46 = vpop.xlane.xlu0 %248 }
 0x1aa   :  { %v452_v47 = vpop.xlane.xlu1 %451 }
 0x1ab   :  { %v470_v48 = vadd.f32 %v452_v47, %v278_v45  ;;  %v423_v49 = vpop.xlane.xlu0 %422 }
 0x1ac   :  { %v463_v50 = vadd.f32 %v423_v49, %v249_v46 }
 0x1ad   :  { %487 = vst.msk [vmem:[%s847_s3 + $0x70] sm:$0xff] %vm472_vm2, %v470_v48 }
 0x1ae   :  { %480 = vst.msk [vmem:[%s847_s3 + $0x38] sm:$0xff] %vm472_vm2, %v463_v50 }
 0x1af   :  { %v281_v51 = vpop.xlane.xlu0 %280 }
 0x1b3   :  { %v455_v44 = vpop.xlane.xlu0 %454 }
 0x1b4   :  { %v471_v52 = vadd.f32 %v455_v44, %v281_v51 }
 0x1b6   :  { %488 = vst.msk [vmem:[%s847_s3 + $0x78] sm:$0xff] %vm472_vm2, %v471_v52 }

</bundles_post_ra>
